<compile_context>
chip_gen: v5e
topology: v5e:2x2
jax: 0.10.0
libtpu: 0.0.40
codegen_flags: <defaults>
</compile_context>

<pallas_src>
import math
from functools import partial

import jax
import jax.numpy as jnp
from jax.experimental import pallas as pl
from jax.experimental.pallas import tpu as pltpu

_BN_EPS = 1e-5
EXPANSION = 4


def _round_up(x, m):
    return (x + m - 1) // m * m


def _pick_tk(kp, max_tk=2048):
    """Largest multiple of 128 that divides kp and is <= max_tk."""
    q = kp // 128
    best = 1
    for d in range(1, min(q, max_tk // 128) + 1):
        if q % d == 0:
            best = d
    return 128 * best


# ---------------------------------------------------------------------------
# Pallas kernel 1: tiled matmul with fused scale/bias (+ optional ReLU)
#   out = act((A @ B) * scale + bias)   -- scale/bias are per output column
#   A, B are bf16; accumulation and epilogue are f32.
# ---------------------------------------------------------------------------
def _matmul_kernel(a_ref, b_ref, s_ref, c_ref, o_ref, acc_ref, *, relu):
    k = pl.program_id(2)

    @pl.when(k == 0)
    def _():
        acc_ref[...] = jnp.zeros_like(acc_ref)

    acc_ref[...] += jnp.dot(a_ref[...], b_ref[...],
                            preferred_element_type=jnp.float32)

    @pl.when(k == pl.num_programs(2) - 1)
    def _():
        out = acc_ref[...] * s_ref[...] + c_ref[...]
        if relu:
            out = jnp.maximum(out, 0.0)
        o_ref[...] = out.astype(o_ref.dtype)


def matmul_scale_bias_act(a, b, scale, bias, relu=False, out_dtype=jnp.bfloat16):
    """a: (M, Kp) bf16, b: (Kp, Np) bf16 (pre-padded: Kp, Np multiples of 128)."""
    M, Kp = a.shape
    Kp2, Np = b.shape
    assert Kp == Kp2 and Kp % 128 == 0 and Np % 128 == 0

    tn = Np if Np <= 512 else 512
    tk = _pick_tk(Kp)
    if M >= 256:
        tm = 256
    elif M >= 128:
        tm = 128
    else:
        tm = _round_up(M, 8)

    grid = (pl.cdiv(M, tm), Np // tn, Kp // tk)

    return pl.pallas_call(
        partial(_matmul_kernel, relu=relu),
        out_shape=jax.ShapeDtypeStruct((M, Np), out_dtype),
        grid_spec=pltpu.PrefetchScalarGridSpec(
            num_scalar_prefetch=0,
            grid=grid,
            in_specs=[
                pl.BlockSpec((tm, tk), lambda i, j, k: (i, k)),
                pl.BlockSpec((tk, tn), lambda i, j, k: (k, j)),
                pl.BlockSpec((1, tn), lambda i, j, k: (0, j)),
                pl.BlockSpec((1, tn), lambda i, j, k: (0, j)),
            ],
            out_specs=pl.BlockSpec((tm, tn), lambda i, j, k: (i, j)),
            scratch_shapes=[pltpu.VMEM((tm, tn), jnp.float32)],
        ),
        compiler_params=pltpu.CompilerParams(
            dimension_semantics=("parallel", "parallel", "arbitrary"),
            vmem_limit_bytes=32 * 1024 * 1024),
    )(a, b, scale, bias)


# ---------------------------------------------------------------------------
# Pallas kernel 2: EMAU EM iterations + reconstruction (per batch element)
#   x : (N, C)  mu : (C, Kp)   Kp = K padded to 128 (masked softmax lanes)
#   x_rec out : (N, C)  -- lane-dense (C = 512) store.
# ---------------------------------------------------------------------------
def _emau_kernel(x_ref, mu_ref, xo_ref, muo_ref, *, stage_num, k_true):
    x = x_ref[0]        # (N, C) f32
    mu = mu_ref[0]      # (C, Kp) f32 (columns >= k_true are zero)
    n = x.shape[0]
    kp = mu.shape[1]
    kmask = jax.lax.broadcasted_iota(jnp.int32, (n, kp), 1) < k_true

    z = None
    for _ in range(stage_num):
        z = jnp.dot(x, mu, preferred_element_type=jnp.float32)        # (N, Kp)
        z = jnp.where(kmask, z, -1e30)                                 # mask pad lanes
        z = jnp.exp(z - jnp.max(z, axis=-1, keepdims=True))            # softmax over k
        z = z * pl.reciprocal(jnp.sum(z, axis=-1, keepdims=True), approx=True)
        z_ = z * pl.reciprocal(1e-6 + jnp.sum(z, axis=0, keepdims=True),
                               approx=True)                            # norm over n
        mu = jax.lax.dot_general(x, z_, (((0,), (0,)), ((), ())),
                                 preferred_element_type=jnp.float32)   # (C, Kp)
        mu = mu * pl.reciprocal(
            1e-6 + jnp.sqrt(jnp.sum(mu * mu, axis=0, keepdims=True)),
            approx=True)                                               # l2 over c

    # x_rec[n, c] = sum_k z[n, k] * mu[c, k]  (== (mu @ z^T)^T), then ReLU
    xr = jax.lax.dot_general(z, mu, (((1,), (1,)), ((), ())),
                             preferred_element_type=jnp.float32)       # (N, C)
    xo_ref[0] = jnp.maximum(xr, 0.0)
    muo_ref[0] = mu


def emau_em(x_nc, mu0, stage_num=3, k_true=64):
    B, N, C = x_nc.shape
    Kp = mu0.shape[-1]
    return pl.pallas_call(
        partial(_emau_kernel, stage_num=stage_num, k_true=k_true),
        out_shape=(jax.ShapeDtypeStruct((B, N, C), jnp.float32),
                   jax.ShapeDtypeStruct((B, C, Kp), jnp.float32)),
        grid_spec=pltpu.PrefetchScalarGridSpec(
            num_scalar_prefetch=0,
            grid=(B,),
            in_specs=[pl.BlockSpec((1, N, C), lambda b: (b, 0, 0)),
                      pl.BlockSpec((1, C, Kp), lambda b: (b, 0, 0))],
            out_specs=[pl.BlockSpec((1, N, C), lambda b: (b, 0, 0)),
                       pl.BlockSpec((1, C, Kp), lambda b: (b, 0, 0))],
        ),
        compiler_params=pltpu.CompilerParams(dimension_semantics=("parallel",)),
    )(x_nc, mu0)


# ---------------------------------------------------------------------------
# Glue: conv as im2col + Pallas matmul, maxpool, bottleneck, EMAU wrapper
# ---------------------------------------------------------------------------
def conv2d(x, p, *, stride=1, padding=0, dilation=1, relu=False,
           out_dtype=jnp.bfloat16):
    """x: NHWC bf16.  p holds pre-packed weights:
       wm (Kp, Np) bf16, scale/bias (1, Np) f32, plus cin/cout/ksize metadata."""
    wm = p["wm"]
    cout, cin, ks = p["cout"], p["cin"], p["ksize"]
    Kp, Np = wm.shape
    B, H, W, C = x.shape
    assert C == cin

    if ks == 1 and padding == 0:
        xs = x[:, ::stride, ::stride, :] if stride > 1 else x
        Ho, Wo = xs.shape[1], xs.shape[2]
        a = xs.reshape(B * Ho * Wo, cin)
        if Kp > cin:
            a = jnp.pad(a, ((0, 0), (0, Kp - cin)))
    else:
        Ho = (H + 2 * padding - dilation * (ks - 1) - 1) // stride + 1
        Wo = (W + 2 * padding - dilation * (ks - 1) - 1) // stride + 1
        xp = jnp.pad(x, ((0, 0), (padding, padding), (padding, padding), (0, 0)))
        cols = []
        for ky in range(ks):
            for kx in range(ks):
                sl = xp[:,
                        ky * dilation: ky * dilation + stride * (Ho - 1) + 1: stride,
                        kx * dilation: kx * dilation + stride * (Wo - 1) + 1: stride,
                        :]
                cols.append(sl)
        k_true = ks * ks * cin
        if Kp > k_true:
            cols.append(jnp.zeros((B, Ho, Wo, Kp - k_true), x.dtype))
        a = jnp.concatenate(cols, axis=-1).reshape(B * Ho * Wo, Kp)

    out = matmul_scale_bias_act(a.astype(jnp.bfloat16), wm, p["scale"], p["bias"],
                                relu=relu, out_dtype=out_dtype)
    if cout < Np:
        out = out[:, :cout]
    return out.reshape(B, Ho, Wo, cout)


def maxpool_ceil(x, k=3, s=2, p=1):
    B, H, W, C = x.shape
    Ho = -(-(H + 2 * p - k) // s) + 1
    Wo = -(-(W + 2 * p - k) // s) + 1
    pad_h = (Ho - 1) * s + k - H
    pad_w = (Wo - 1) * s + k - W
    assert pad_h >= p and pad_w >= p
    neg = jnp.array(-jnp.inf, dtype=x.dtype)
    return jax.lax.reduce_window(
        x, neg, jax.lax.max,
        (1, k, k, 1), (1, s, s, 1),
        [(0, 0), (p, pad_h - p), (p, pad_w - p), (0, 0)])


def bottleneck(x, p):
    residual = x
    out = conv2d(x, p["c1"], relu=True)
    out = conv2d(out, p["c2"], stride=p["stride"], padding=p["d"],
                 dilation=p["d"], relu=True)
    out = conv2d(out, p["c3"], relu=False)
    if p["ds"] is not None:
        residual = conv2d(x, p["ds"], stride=p["stride"], relu=False)
    return jnp.maximum(out + residual, 0.0)


def emau_forward(x, p, stage_num=3):
    idn = x                                              # bf16 (B, H, W, C)
    x1 = conv2d(x, p["conv1"], relu=False, out_dtype=jnp.float32)  # 1x1 conv + bias
    B, H, W, C = x1.shape
    N = H * W
    x_nc = x1.reshape(B, N, C)                           # n = h*W + w (matches torch)
    Kp = p["mu"].shape[-1]
    mu0 = jnp.broadcast_to(p["mu"], (B, C, Kp))
    x_rec, mu = emau_em(x_nc, mu0, stage_num, k_true=p["k"])   # x_rec already ReLU'd
    x2 = x_rec.reshape(B, H, W, C).astype(jnp.bfloat16)
    x2 = conv2d(x2, p["conv2"], relu=False)              # 1x1 conv (no bias) + BN
    out = jnp.maximum(x2 + idn, 0.0)
    return out, mu[:, :, :p["k"]]


# ---------------------------------------------------------------------------
# Deterministic parameter construction (weights pre-packed for the matmul)
# ---------------------------------------------------------------------------
class _KeyGen:
    def __init__(self, seed):
        self._k = jax.random.PRNGKey(seed)
        self._i = 0

    def __call__(self):
        self._i += 1
        return jax.random.fold_in(self._k, self._i)


def _conv_weight(kg, cout, cin, kh, kw):
    n = kh * kw * cout
    return jax.random.normal(kg(), (cout, cin, kh, kw), jnp.float32) * math.sqrt(2.0 / n)


def _pack_conv(w, scale_vec, bias_vec):
    """Pre-transpose + zero-pad (K, N to multiples of 128) + cast weights to bf16."""
    cout, cin, kh, kw = w.shape
    K = kh * kw * cin
    Kp, Np = _round_up(K, 128), _round_up(cout, 128)
    if kh == 1 and kw == 1:
        wm = w.reshape(cout, cin).T
    else:
        wm = jnp.transpose(w, (2, 3, 1, 0)).reshape(K, cout)
    wm = jnp.zeros((Kp, Np), jnp.float32).at[:K, :cout].set(wm).astype(jnp.bfloat16)
    s = jnp.zeros((1, Np), jnp.float32).at[0, :cout].set(scale_vec)
    c = jnp.zeros((1, Np), jnp.float32).at[0, :cout].set(bias_vec)
    return {"wm": wm, "scale": s, "bias": c,
            "cout": cout, "cin": cin, "ksize": kh}


def _make_conv_bn(kg, cin, cout, ksize):
    w = _conv_weight(kg, cout, cin, ksize, ksize)
    scale = jnp.full((cout,), 1.0 / math.sqrt(1.0 + _BN_EPS), jnp.float32)
    bias = jnp.zeros((cout,), jnp.float32)
    return _pack_conv(w, scale, bias)


def _make_conv_bias(kg, cin, cout, ksize):
    w = _conv_weight(kg, cout, cin, ksize, ksize)
    b = 0.01 * jax.random.normal(kg(), (cout,), jnp.float32)
    return _pack_conv(w, jnp.ones((cout,), jnp.float32), b)


def _make_layer_params(kg, inplanes, planes, blocks, stride=1, dilation=1, multi_grid=1):
    def gen_mg(i, grids):
        return grids[i % len(grids)] if isinstance(grids, tuple) else 1

    params = []
    for i in range(blocks):
        cin = inplanes if i == 0 else planes * EXPANSION
        ds = None
        if i == 0 and (stride != 1 or inplanes != planes * EXPANSION):
            ds = _make_conv_bn(kg, inplanes, planes * EXPANSION, 1)
        params.append({
            "c1": _make_conv_bn(kg, cin, planes, 1),
            "c2": _make_conv_bn(kg, planes, planes, 3),
            "c3": _make_conv_bn(kg, planes, planes * EXPANSION, 1),
            "stride": stride if i == 0 else 1,
            "d": dilation * gen_mg(i, multi_grid),
            "ds": ds,
        })
    return params, planes * EXPANSION


def make_params(layers, n_classes, seed=0):
    kg = _KeyGen(seed)
    P = {}
    P["stem1"] = _make_conv_bn(kg, 3, 64, 3)
    P["stem2"] = _make_conv_bn(kg, 64, 64, 3)
    P["stem3"] = _make_conv_bn(kg, 64, 128, 3)
    inplanes = 128
    P["layer1"], inplanes = _make_layer_params(kg, inplanes, 64, layers[0])
    P["layer2"], inplanes = _make_layer_params(kg, inplanes, 128, layers[1], stride=2)
    P["layer3"], inplanes = _make_layer_params(kg, inplanes, 256, layers[2], stride=1, dilation=2)
    P["layer4"], inplanes = _make_layer_params(kg, inplanes, 512, layers[3], stride=1,
                                               dilation=4, multi_grid=(1, 1, 1))
    P["fc0"] = _make_conv_bn(kg, 2048, 512, 3)
    c, kb = 512, 64
    mu = jax.random.normal(kg(), (1, c, kb), jnp.float32) * math.sqrt(2.0 / kb)
    mu = mu / (1e-6 + jnp.sqrt(jnp.sum(mu * mu, axis=1, keepdims=True)))   # l2norm over c
    mu_p = jnp.zeros((1, c, _round_up(kb, 128)), jnp.float32).at[:, :, :kb].set(mu)
    P["emau"] = {"conv1": _make_conv_bias(kg, c, c, 1),
                 "mu": mu_p, "k": kb,
                 "conv2": _make_conv_bn(kg, c, c, 1)}
    P["fc1"] = _make_conv_bn(kg, 512, 256, 3)
    P["fc2"] = _make_conv_bias(kg, 256, n_classes, 1)
    return P


# ---------------------------------------------------------------------------
# Full forward pass
# ---------------------------------------------------------------------------
def ema_resnet_forward(x_nchw, P):
    x = jnp.transpose(x_nchw, (0, 2, 3, 1)).astype(jnp.bfloat16)   # NCHW -> NHWC bf16
    x = conv2d(x, P["stem1"], stride=2, padding=1, relu=True)
    x = conv2d(x, P["stem2"], stride=1, padding=1, relu=True)
    x = conv2d(x, P["stem3"], stride=1, padding=1, relu=True)
    x = maxpool_ceil(x)
    for name in ("layer1", "layer2", "layer3", "layer4"):
        for bp in P[name]:
            x = bottleneck(x, bp)
    x = conv2d(x, P["fc0"], stride=1, padding=1, relu=True)
    x, _mu = emau_forward(x, P["emau"], stage_num=3)
    x = conv2d(x, P["fc1"], stride=1, padding=1, relu=True)  # fc1 ConvBNReLU; Dropout2d = id
    x = conv2d(x, P["fc2"], stride=1, padding=0, relu=False, out_dtype=jnp.float32)
    return [jnp.transpose(x, (0, 3, 1, 2))]                   # back to NCHW, list like torch


if __name__ == "__main__":
    key = jax.random.PRNGKey(0)
    # Input chosen so the EMAU stage sees an 8x8 feature map (60 -> 30 -> 16 -> 8).
    x = jax.random.normal(key, (2, 3, 60, 60), jnp.float32)   # NCHW like PyTorch
    params = make_params(layers=(1, 1, 1, 1), n_classes=8)
    out = ema_resnet_forward(x, params)[0]
    out = jax.block_until_ready(out)
    assert out.shape == (2, 8, 8, 8), out.shape
    assert bool(jnp.all(jnp.isfinite(out)))
    print("KERNEL_OK")
</pallas_src>

<mosaic_0001>
module attributes {stable_mosaic.version = 11 : i64} {
  func.func @_matmul_kernel(%arg0: i32, %arg1: i32, %arg2: i32, %arg3: memref<256x128xbf16, #tpu.memory_space<vmem>>, %arg4: memref<128x128xbf16, #tpu.memory_space<vmem>>, %arg5: memref<1x128xf32, #tpu.memory_space<vmem>>, %arg6: memref<1x128xf32, #tpu.memory_space<vmem>>, %arg7: memref<256x128xbf16, #tpu.memory_space<vmem>>, %arg8: memref<256x128xf32, #tpu.memory_space<vmem>>) attributes {dimension_semantics = [#tpu.dimension_semantics<parallel>, #tpu.dimension_semantics<parallel>, #tpu.dimension_semantics<arbitrary>], iteration_bounds = array<i64: 8, 1, 1>, scalar_prefetch = 0 : i64, scratch_operands = 1 : i64, tpu.core_type = #tpu.core_type<tc>, window_params = [{transform_indices = @transform_0, window_bounds = array<i64: 256, 128>}, {transform_indices = @transform_1, window_bounds = array<i64: 128, 128>}, {transform_indices = @transform_2, window_bounds = array<i64: 1, 128>}, {transform_indices = @transform_3, window_bounds = array<i64: 1, 128>}, {transform_indices = @transform_4, window_bounds = array<i64: 256, 128>}]} {
    %c0_i32 = arith.constant 0 : i32
    %0 = arith.cmpi eq, %arg2, %c0_i32 : i32
    %1 = arith.extui %0 : i1 to i32
    %c0_i32_0 = arith.constant 0 : i32
    %2 = arith.cmpi ne, %1, %c0_i32_0 : i32
    scf.if %2 {
      %cst_10 = arith.constant 0.000000e+00 : f32
      %12 = vector.broadcast %cst_10 : f32 to vector<256x128xf32>
      %c0_11 = arith.constant 0 : index
      %c0_12 = arith.constant 0 : index
      %13 = vector.load %arg8[%c0_11, %c0_12] : memref<256x128xf32, #tpu.memory_space<vmem>>, vector<256x128xf32>
      tpu.vector_store %arg8[%c0_11, %c0_12], %12 {strides = array<i32>} : memref<256x128xf32, #tpu.memory_space<vmem>>, vector<256x128xf32>,
    } else {
    }
    %c0 = arith.constant 0 : index
    %c0_1 = arith.constant 0 : index
    %3 = vector.load %arg8[%c0, %c0_1] : memref<256x128xf32, #tpu.memory_space<vmem>>, vector<256x128xf32>
    %c0_2 = arith.constant 0 : index
    %c0_3 = arith.constant 0 : index
    %4 = vector.load %arg3[%c0_2, %c0_3] : memref<256x128xbf16, #tpu.memory_space<vmem>>, vector<256x128xbf16>
    %c0_4 = arith.constant 0 : index
    %c0_5 = arith.constant 0 : index
    %5 = vector.load %arg4[%c0_4, %c0_5] : memref<128x128xbf16, #tpu.memory_space<vmem>>, vector<128x128xbf16>
    %cst = arith.constant dense<0.000000e+00> : vector<256x128xf32>
    %6 = tpu.matmul %4, %5, %cst {dimension_numbers = #tpu.dot_dimension_numbers<[1], [0], [0], [1], [0, 0, 1, 1], [], []>} : vector<256x128xbf16>, vector<128x128xbf16>, vector<256x128xf32> -> vector<256x128xf32>
    %7 = arith.addf %3, %6 : vector<256x128xf32>
    %c0_6 = arith.constant 0 : index
    %c0_7 = arith.constant 0 : index
    %8 = vector.load %arg8[%c0_6, %c0_7] : memref<256x128xf32, #tpu.memory_space<vmem>>, vector<256x128xf32>
    tpu.vector_store %arg8[%c0_6, %c0_7], %7 {strides = array<i32>} : memref<256x128xf32, #tpu.memory_space<vmem>>, vector<256x128xf32>,
    %c0_i32_8 = arith.constant 0 : i32
    %9 = arith.cmpi eq, %arg2, %c0_i32_8 : i32
    %10 = arith.extui %9 : i1 to i32
    %c0_i32_9 = arith.constant 0 : i32
    %11 = arith.cmpi ne, %10, %c0_i32_9 : i32
    scf.if %11 {
      %c0_10 = arith.constant 0 : index
      %c0_11 = arith.constant 0 : index
      %12 = vector.load %arg8[%c0_10, %c0_11] : memref<256x128xf32, #tpu.memory_space<vmem>>, vector<256x128xf32>
      %c0_12 = arith.constant 0 : index
      %c0_13 = arith.constant 0 : index
      %13 = vector.load %arg5[%c0_12, %c0_13] : memref<1x128xf32, #tpu.memory_space<vmem>>, vector<1x128xf32>
      %14 = vector.broadcast %13 : vector<1x128xf32> to vector<256x128xf32>
      %15 = arith.mulf %12, %14 : vector<256x128xf32>
      %c0_14 = arith.constant 0 : index
      %c0_15 = arith.constant 0 : index
      %16 = vector.load %arg6[%c0_14, %c0_15] : memref<1x128xf32, #tpu.memory_space<vmem>>, vector<1x128xf32>
      %17 = vector.broadcast %16 : vector<1x128xf32> to vector<256x128xf32>
      %18 = arith.addf %15, %17 : vector<256x128xf32>
      %cst_16 = arith.constant 0.000000e+00 : f32
      %19 = vector.broadcast %cst_16 : f32 to vector<256x128xf32>
      %20 = arith.maximumf %18, %19 : vector<256x128xf32>
      %21 = arith.truncf %20 : vector<256x128xf32> to vector<256x128xbf16>
      %c0_17 = arith.constant 0 : index
      %c0_18 = arith.constant 0 : index
      %22 = vector.load %arg7[%c0_17, %c0_18] : memref<256x128xbf16, #tpu.memory_space<vmem>>, vector<256x128xbf16>
      tpu.vector_store %arg7[%c0_17, %c0_18], %21 {strides = array<i32>} : memref<256x128xbf16, #tpu.memory_space<vmem>>, vector<256x128xbf16>,
    } else {
    }
    return
  }
  func.func @transform_0(%arg0: i32, %arg1: i32, %arg2: i32) -> (i32, i32) {
    %c0_i32 = arith.constant 0 : i32
    return %arg0, %arg2 : i32, i32
  }
  func.func @transform_1(%arg0: i32, %arg1: i32, %arg2: i32) -> (i32, i32) {
    %c0_i32 = arith.constant 0 : i32
    return %arg2, %arg1 : i32, i32
  }
  func.func @transform_2(%arg0: i32, %arg1: i32, %arg2: i32) -> (i32, i32) {
    %c0_i32 = arith.constant 0 : i32
    %c0_i32_0 = arith.constant 0 : i32
    return %c0_i32, %arg1 : i32, i32
  }
  func.func @transform_3(%arg0: i32, %arg1: i32, %arg2: i32) -> (i32, i32) {
    %c0_i32 = arith.constant 0 : i32
    %c0_i32_0 = arith.constant 0 : i32
    return %c0_i32, %arg1 : i32, i32
  }
  func.func @transform_4(%arg0: i32, %arg1: i32, %arg2: i32) -> (i32, i32) {
    %c0_i32 = arith.constant 0 : i32
    return %arg0, %arg1 : i32, i32
  }
}

</mosaic_0001>

<bundles_post_ra>
// kernel: tpu_custom_call.1
= control target key start
LH: loop header
LB: loop body
LE: loop exit
PB: predicated region body
PF: predicated region fallthrough
CT: control target
= control target key end

     0   :  { %s1948_s0 = inlined_call_operand.hbm [shape: bf16[1800,128], index: 0, kind: input, shape index: {}]   ;;  %s1949_s1 = inlined_call_operand.hbm [shape: bf16[128,128], index: 1, kind: input, shape index: {}]   ;;  %s1950_s2 = inlined_call_operand.vmem [shape: f32[1,128], index: 2, kind: input, shape index: {}]   ;;  %s1951_s3 = inlined_call_operand.vmem [shape: f32[1,128], index: 3, kind: input, shape index: {}]   ;;  %s1952_s4 = inlined_call_operand.hbm [shape: bf16[1800,128], index: 4, kind: output, shape index: {}]  }
   0x1   :  { %1954 = sst [smem:[#allocation12_spill]] %s1949_s1 }
   0x2   :  { %9 = vsyncpa [#allocation4], 0 }
   0x3   :  { %11 = vsyncpa [#allocation4 + $0x1], 0 }
   0x4   :  { %12 = vsyncpa [#allocation7], 0 }
   0x5   :  { %13 = vsyncpa [#allocation5], 0 }
   0x6   :  { %15 = vsyncpa [#allocation5 + $0x1], 0  ;;  %s1626_s15 = smov 0   ;;  %s1628_s16 = smov 0  }
   0x7   :  { %s1630_s17 = smov 0   ;;  %s1632_s18 = smov 0  }
   0x8   :  { %s1634_s19 = smov 0   ;;  %s1636_s20 = smov 0  }
   0x9 LB: > { %s1082_s21 = sadd.s32 4294967295, %s1590_s20   ;;  %s1083_s22 = sadd.s32 4294967294, %s1590_s20   ;;  %s1590_s20 = sphi %s1636_s20, %s21_s20   ;;  %s1586_s19 = sphi %s1634_s19, %s1969_s19   ;;  %s1582_s18 = sphi %s1632_s18, %s1968_s18   ;;  %s1578_s17 = sphi %s1630_s17, %s1967_s17   ;;  %s1574_s16 = sphi %s1628_s16, %s1966_s16   ;;  %s1570_s15 = sphi %s1626_s15, %s1965_s15  }
   0xa   : > { %s40_s23 = sadd.s32 1, %s1586_s19  ;;  %s49_s24 = sadd.s32 1, %s1578_s17 }
   0xb   : > { %p42_p0 = scmp.ge.s32.totalorder %s40_s23, 8  ;;  %p56_p1 = scmp.ne.s32.totalorder %s1578_s17, %s1574_s16 }
   0xc   : > { %p57_p2 = scmp.eq.s32.totalorder %s1590_s20, 0  ;;  %p62_p3 = scmp.ne.s32.totalorder %s1574_s16, %s1570_s15 }
   0xd   : > { %s1971_s23 = smov (%p42_p0, %s40_s23), 0  ;;  %p1671_p5 = scmp.eq.s32.totalorder %s1082_s21, 0 }
   0xe   : > { %p1667_p4 = por %p57_p2, %p56_p1  ;;  %s44_s27 = ssub.s32 %s1586_s19, %s1971_s23 }
   0xf   : > { %p168_p6 = scmp.eq.s32.totalorder %s1082_s21, 7  ;;  %p47_p7 = scmp.eq.s32.totalorder %s44_s27, 0 }
  0x10   : > { %p1679_p8 = por %p1671_p5, %p62_p3  ;;  %p174_p10 = scmp.eq.s32.totalorder %s1083_s22, 7 }
  0x11   : > { %p1683_p9 = por %p168_p6, %p56_p1  ;;  %p1084_p12 = scmp.ge.s32.totalorder %s1590_s20, 1 }
  0x12   : > { %s1688_s30 = scalar_select %p47_p7, %s1578_s17, %s49_s24  }
  0x13   : > { %p1690_p11 = por %p174_p10, %p62_p3  ;;  %p181_p13 = scmp.lt.s32.totalorder %s1590_s20, 9 }
  0x14   : > { %s1960_s1 = sld [smem:[#allocation12_spill]]  ;;  %s1592_s10 = smov [#allocation6]  }
  0x15   : > { %p1699_p0 = pnand %p1084_p12, %p181_p13  ;;  %s198_s11 = sshll.u32 %s1592_s10, 4  ;;  %s199_s11 = int_to_ptr.vmem [resolvable:$true] %s198_s11 }
  0x16   : > { %s1593_s12 = smov 64   ;;  %s1594_s13 = smov 4  }
  0x17   : > { %p1356_p1 = pneg %p1699_p0  ;;  %p1088_p3 = scmp.ge.s32.totalorder %s1590_s20, 8 }
  0x19   : > { %p1357_p2 = pnand %p1356_p1, %p1671_p5  ;;  %220 = sbr.rel (%p1088_p3) target bundleno = 67 (0x43), region = 28 }
  0x1a   : > { %s196_s8 = sshll.u32 %s1960_s1, 4  ;;  %s197_s8 = int_to_ptr.hbm [resolvable:$true] %s196_s8 }
  0x1b   : > { %1359 = dma.hbm_to_vmem [thread:$0]  (!%p1357_p2), %s197_s8, 1024, %s199_s11, [#allocation7], %s1593_s12, %s1593_s12, %s1594_s13  }
  0x1e   : > { %223 = sbr.rel (!%p1667_p4) target bundleno = 67 (0x43), region = 32  ;;  %s224_s14 = sand.u32 (%p1667_p4), 1, %s1578_s17  }
  0x1f   : > { %s1090_s21 = sshll.u32 (%p1667_p4), %s1586_s19, 5  ;;  %s1089_s22 = sshll.u32 (%p1667_p4), %s224_s14, 7 }
  0x20   : > { %s230_s24 = ssub.s32 (%p1667_p4), 225, %s1090_s21  ;;  %s1715_s8 = scalar_lea.sflag (%p1667_p4), [#allocation4], %s224_s14 }
  0x21   : > { %p231_p6 = scmp.lt.s32.totalorder (%p1667_p4), %s230_s24, 32  ;;  %s228_s10 = scalar_lea.vmem (%p1667_p4), [#allocation3], %s1089_s22 }
  0x23   : > { %s1973_s24 = smov (!%p231_p6, %s230_s24), 32 }
  0x24   : > { %s1091_s27 = sshll.u32 %s1973_s24, 2 }
  0x25   : > { %s234_s6 = ssub.s32 128, %s1091_s27 }
  0x26   : > { %s235_s7 = sshll.u32 %s234_s6, 4 }
  0x27   : > { %236 = vsyncadd %s1715_s8, %s235_s7  ;;  %p1718_p4 = scmp.ne.s32.totalorder %s1091_s27, 0  ;;  %s1205_s11 = sshll.u32 %s1586_s19, 7 }
  0x28   : > { %s240_s21 = scalar_lea.hbm %s1948_s0, %s1205_s11  ;;  %s1726_s1 = sshll.u32 %s228_s10, 4  ;;  %s245_s1 = int_to_ptr.vmem [resolvable:$true] %s1726_s1 }
  0x29   : > { %s242_s14 = sshll.u32 %s240_s21, 4  ;;  %s1953_s22 = sshll.u32 %s1973_s24, 6  ;;  %s1729_s14 = int_to_ptr.hbm [resolvable:$true] %s242_s14 }
  0x2a   : > { %s1454_s6 = sshra.s32 %s1729_s14, 4  ;;  %s1456_s27 = sshrl.u32 %s1953_s22, 4  ;;  %s1455_s6 = int_to_ptr.hbm [resolvable:$true] %s1454_s6 }
  0x2b   : > { %s1461_s7 = scalar_lea.hbm %s1455_s6, %s1456_s27  ;;  %s1465_s10 = scalar_lea.hbm %s1948_s0, 900 }
  0x2c   : > { %p1462_p7 = scmp.ne.s32.totalorder %s1455_s6, %s1461_s7  ;;  %p1467_p13 = scmp.lt.s32.totalorder %s1465_s10, %s1461_s7 }
  0x2e   : > { %p1463_p10 = pnand %p1462_p7, %p1718_p4 }
  0x30   : > { %p1464_p12 = pneg %p1463_p10 }
  0x32   : > { %p1469_p1 = pnand %p1467_p13, %p1464_p12 }
  0x34   : > { %1472 = shalt.err (!%p1469_p1)
}
  0x35   : > { %s1473_s13 = sshra.s32 %s245_s1, 4  ;;  %s1595_s6 = smov [#allocation3]   ;;  %s1474_s13 = int_to_ptr.vmem [resolvable:$true] %s1473_s13 }
  0x36   : > { %s1480_s21 = scalar_lea.vmem %s1474_s13, %s1456_s27  ;;  %s1484_s22 = scalar_lea.vmem %s1595_s6, 256 }
  0x37   : > { %p1481_p2 = scmp.ne.s32.totalorder %s1474_s13, %s1480_s21  ;;  %p1486_p7 = scmp.lt.s32.totalorder %s1484_s22, %s1480_s21 }
  0x39   : > { %p1482_p3 = pnand %p1481_p2, %p1718_p4 }
  0x3b   : > { %p1483_p6 = pneg %p1482_p3 }
  0x3d   : > { %p1488_p10 = pnand %p1486_p7, %p1483_p6 }
  0x3f   : > { %1491 = shalt.err (!%p1488_p10)
}
  0x40   : > { %s1596_s12 = smov 64   ;;  %s1597_s7 = smov 4  }
  0x41   : > { %s1963_s11 = sshll.u32 %s1973_s24, 6 }
  0x42   : > { %250 = dma.hbm_to_vmem [thread:$0]  (%p1718_p4), %s1729_s14, %s1963_s11, %s245_s1, %s1715_s8, %s1596_s12, %s1596_s12, %s1597_s7  }
  0x43 PF: > { %256 = sbr.rel (%p1699_p0) target bundleno = 337 (0x151), region = 36  ;;  %s1755_s22 = sand.u32 (!%p1699_p0), 1, %s1574_s16  }
  0x44   : > { %s1097_s27 = sshll.u32 (!%p1699_p0), %s1755_s22, 7  ;;  %s259_s10 = scalar_lea.sflag (!%p1699_p0), [#allocation4], %s1755_s22 }
  0x45   : > { %s1761_s13 = scalar_lea.vmem (!%p1699_p0), [#allocation3], %s1097_s27 }
  0x48   : > { %1557 = dma.done.wait (%p1679_p8), %s259_s10, 2048  }
  0x49   : > { %1559 = vsyncadd (%p1679_p8), %s259_s10, 4294965248 }
  0x4a   : > { %1561 = dma.done.wait (%p1671_p5), [#allocation7], 1024  }
  0x4b   : > { %1563 = vsyncadd (%p1671_p5), [#allocation7], 4294966272  ;;  %v1229_v0 = vld [vmem:[#allocation6 + $0x38] sm:$0xff]  ;;  %v1228_v1 = vld [vmem:[#allocation6 + $0x30] sm:$0xff]  ;;  %s1813_s24 = scalar_lea.vmem [#allocation8], %s1097_s27  ;;  %s933_s8 = scalar_lea.sflag [#allocation5], %s1755_s22 }
  0x4c   : > { %576 = vmatpush.bf16.msra.mxu0 %v1229_v0  ;;  %1326 = vmatpush.bf16.msra.mxu1 %v1229_v0  ;;  %v1227_v2 = vld [vmem:[#allocation6 + $0x28] sm:$0xff]  ;;  %v1226_v3 = vld [vmem:[#allocation6 + $0x20] sm:$0xff]  ;;  %v1225_v4 = vld [vmem:[#allocation6 + $0x18] sm:$0xff]  ;;  %s1197_s25 = sshll.u32 (%p1683_p9), %s1582_s18, 5 }
  0x4d   : > { %1327 = vmatpush.bf16.msra.mxu2 %v1229_v0  ;;  %1328 = vmatpush.bf16.msra.mxu3 %v1229_v0  ;;  %v1224_v5 = vld [vmem:[#allocation6 + $0x10] sm:$0xff]  ;;  %v1223_v6 = vld [vmem:[#allocation6 + $0x8] sm:$0xff]  ;;  %v1222_v7 = vld [vmem:[#allocation6] sm:$0xff]  ;;  %s941_s14 = ssub.s32 (%p1683_p9), 225, %s1197_s25 }
  0x4e   : > { %v1206_v8 = vld [vmem:[%s1761_s13] sm:$0xff]  ;;  %v1207_v12 = vld [vmem:[%s1761_s13 + $0x8] sm:$0xff]  ;;  %v1208_v16 = vld [vmem:[%s1761_s13 + $0x10] sm:$0xff]  ;;  %p942_p5 = scmp.lt.s32.totalorder (%p1683_p9), %s941_s14, 32 }
  0x4f   : > { %v1210_v9 = vld [vmem:[%s1761_s13 + $0x20] sm:$0xff]  ;;  %v1211_v13 = vld [vmem:[%s1761_s13 + $0x28] sm:$0xff]  ;;  %v1212_v17 = vld [vmem:[%s1761_s13 + $0x30] sm:$0xff] }
  0x50   : > { %577 = vmatpush.bf16.msra.mxu0 %v1228_v1  ;;  %1329 = vmatpush.bf16.msra.mxu1 %v1228_v1  ;;  %v1214_v10 = vld [vmem:[%s1761_s13 + $0x40] sm:$0xff]  ;;  %v1215_v14 = vld [vmem:[%s1761_s13 + $0x48] sm:$0xff]  ;;  %v1216_v18 = vld [vmem:[%s1761_s13 + $0x50] sm:$0xff] }
  0x51   : > { %1330 = vmatpush.bf16.msra.mxu2 %v1228_v1  ;;  %1331 = vmatpush.bf16.msra.mxu3 %v1228_v1  ;;  %v1218_v11 = vld [vmem:[%s1761_s13 + $0x60] sm:$0xff]  ;;  %v1219_v15 = vld [vmem:[%s1761_s13 + $0x68] sm:$0xff]  ;;  %v1220_v19 = vld [vmem:[%s1761_s13 + $0x70] sm:$0xff] }
  0x52   : > { %v1209_v20 = vld [vmem:[%s1761_s13 + $0x18] sm:$0xff]  ;;  %v1790_v26 = vld [vmem:[%s1950_s2] ss:$0 sm:$0xff] }
  0x53   : > { %v1213_v21 = vld [vmem:[%s1761_s13 + $0x38] sm:$0xff]  ;;  %v1796_v28 = vld [vmem:[%s1951_s3] ss:$0 sm:$0xff] }
  0x54   : > { %578 = vmatpush.bf16.msra.mxu0 %v1227_v2  ;;  %1332 = vmatpush.bf16.msra.mxu1 %v1227_v2  ;;  %v1217_v22 = vld [vmem:[%s1761_s13 + $0x58] sm:$0xff] }
  0x55   : > { %1333 = vmatpush.bf16.msra.mxu2 %v1227_v2  ;;  %1334 = vmatpush.bf16.msra.mxu3 %v1227_v2  ;;  %v1221_v23 = vld [vmem:[%s1761_s13 + $0x78] sm:$0xff] }
  0x58   : > { %579 = vmatpush.bf16.msra.mxu0 %v1226_v3  ;;  %1335 = vmatpush.bf16.msra.mxu1 %v1226_v3 }
  0x59   : > { %1336 = vmatpush.bf16.msra.mxu2 %v1226_v3  ;;  %1337 = vmatpush.bf16.msra.mxu3 %v1226_v3 }
  0x5c   : > { %580 = vmatpush.bf16.msra.mxu0 %v1225_v4  ;;  %1338 = vmatpush.bf16.msra.mxu1 %v1225_v4 }
  0x5d   : > { %1339 = vmatpush.bf16.msra.mxu2 %v1225_v4  ;;  %1340 = vmatpush.bf16.msra.mxu3 %v1225_v4 }
  0x60   : > { %581 = vmatpush.bf16.msra.mxu0 %v1224_v5  ;;  %1341 = vmatpush.bf16.msra.mxu1 %v1224_v5 }
  0x61   : > { %1342 = vmatpush.bf16.msra.mxu2 %v1224_v5  ;;  %1343 = vmatpush.bf16.msra.mxu3 %v1224_v5 }
  0x64   : > { %582 = vmatpush.bf16.msra.mxu0 %v1223_v6  ;;  %1344 = vmatpush.bf16.msra.mxu1 %v1223_v6 }
  0x65   : > { %1345 = vmatpush.bf16.msra.mxu2 %v1223_v6  ;;  %1346 = vmatpush.bf16.msra.mxu3 %v1223_v6 }
  0x68   : > { %583 = vmatpush.bf16.msra.mxu0 %v1222_v7  ;;  %1347 = vmatpush.bf16.msra.mxu1 %v1222_v7 }
  0x69   : > { %1348 = vmatpush.bf16.msra.mxu2 %v1222_v7  ;;  %1349 = vmatpush.bf16.msra.mxu3 %v1222_v7 }
  0x6b   : > { %584 = vmatmul.bf16.vlgmr.msra.gmra.mxu0 %v1206_v8  ;;  %604 = vmatmul.bf16.vlgmr.msra.gmra.mxu1 %v1210_v9 }
  0x6c   : > { %624 = vmatmul.bf16.vlgmr.msra.gmra.mxu2 %v1214_v10  ;;  %644 = vmatmul.bf16.vlgmr.msra.gmra.mxu3 %v1218_v11 }
  0x7b   : > { %589 = vmatmul.bf16.gmra.mxu0 %v1207_v12  ;;  %609 = vmatmul.bf16.gmra.mxu1 %v1211_v13 }
  0x7c   : > { %629 = vmatmul.bf16.gmra.mxu2 %v1215_v14  ;;  %649 = vmatmul.bf16.gmra.mxu3 %v1219_v15 }
  0x8b   : > { %594 = vmatmul.bf16.gmra.mxu0 %v1208_v16  ;;  %614 = vmatmul.bf16.gmra.mxu1 %v1212_v17 }
  0x8c   : > { %634 = vmatmul.bf16.gmra.mxu2 %v1216_v18  ;;  %654 = vmatmul.bf16.gmra.mxu3 %v1220_v19 }
  0x9b   : > { %599 = vmatmul.bf16.gmra.mxu0 %v1209_v20  ;;  %619 = vmatmul.bf16.gmra.mxu1 %v1213_v21 }
  0x9c   : > { %639 = vmatmul.bf16.gmra.mxu2 %v1217_v22  ;;  %659 = vmatmul.bf16.gmra.mxu3 %v1221_v23 }
  0xe8   : > { %v585_v24 = vpop.f32.mrf.mxu0  ;;  %v605_v25 = vpop.f32.mrf.mxu1 }
  0xe9   : > { %v768_v27 = vmul.f32 %v1790_v26, %v585_v24  ;;  %v776_v29 = vmul.f32 %v1790_v26, %v605_v25 }
  0xeb   : > { %v804_v34 = vadd.f32 %v1796_v28, %v768_v27  ;;  %v812_v35 = vadd.f32 %v1796_v28, %v776_v29 }
  0xed   : > { %v836_v42 = vmax.f32 %v804_v34, 0.0  ;;  %v844_v43 = vmax.f32 %v812_v35, 0.0 }
  0xef   : > { %v625_v30 = vpop.f32.mrf.mxu2  ;;  %v645_v31 = vpop.f32.mrf.mxu3 }
  0xf0   : > { %v587_v32 = vpop.f32.mrf.mxu0  ;;  %v607_v33 = vpop.f32.mrf.mxu1  ;;  %v784_v40 = vmul.f32 %v1790_v26, %v625_v30  ;;  %v792_v41 = vmul.f32 %v1790_v26, %v645_v31 }
  0xf1   : > { %v769_v36 = vmul.f32 %v1790_v26, %v587_v32  ;;  %v777_v37 = vmul.f32 %v1790_v26, %v607_v33 }
  0xf2   : > { %v820_v50 = vadd.f32 %v1796_v28, %v784_v40  ;;  %v828_v51 = vadd.f32 %v1796_v28, %v792_v41 }
  0xf3   : > { %v805_v38 = vadd.f32 %v1796_v28, %v769_v36  ;;  %v813_v39 = vadd.f32 %v1796_v28, %v777_v37 }
  0xf4   : > { %v852_v58 = vmax.f32 %v820_v50, 0.0  ;;  %v860_v59 = vmax.f32 %v828_v51, 0.0 }
  0xf5   : > { %v837_v44 = vmax.f32 %v805_v38, 0.0  ;;  %v845_v45 = vmax.f32 %v813_v39, 0.0 }
  0xf7   : > { %v1234_v46 = vpack.c.bf16 %v837_v44, %v836_v42  ;;  %v1254_v47 = vpack.c.bf16 %v845_v45, %v844_v43  ;;  %v627_v48 = vpop.f32.mrf.mxu2  ;;  %v647_v49 = vpop.f32.mrf.mxu3 }
  0xf8   : > { %v785_v52 = vmul.f32 %v1790_v26, %v627_v48  ;;  %v793_v53 = vmul.f32 %v1790_v26, %v647_v49  ;;  %v590_v54 = vpop.f32.mrf.mxu0  ;;  %v610_v55 = vpop.f32.mrf.mxu1 }
  0xf9   : > { %1235 = vst [vmem:[%s1813_s24] sm:$0xff] %v1234_v46   ;;  %v770_v62 = vmul.f32 %v1790_v26, %v590_v54  ;;  %v778_v63 = vmul.f32 %v1790_v26, %v610_v55 }
  0xfa   : > { %1314 = vst [vmem:[%s1813_s24 + $0x20] sm:$0xff] %v1254_v47   ;;  %v821_v56 = vadd.f32 %v1796_v28, %v785_v52  ;;  %v829_v57 = vadd.f32 %v1796_v28, %v793_v53 }
  0xfb   : > { %v806_v6 = vadd.f32 %v1796_v28, %v770_v62  ;;  %v814_v7 = vadd.f32 %v1796_v28, %v778_v63 }
  0xfc   : > { %v853_v60 = vmax.f32 %v821_v56, 0.0  ;;  %v861_v61 = vmax.f32 %v829_v57, 0.0 }
  0xfd   : > { %v838_v14 = vmax.f32 %v806_v6, 0.0  ;;  %v846_v15 = vmax.f32 %v814_v7, 0.0 }
  0xfe   : > { %v1274_v0 = vpack.c.bf16 %v853_v60, %v852_v58  ;;  %v1294_v1 = vpack.c.bf16 %v861_v61, %v860_v59 }
  0xff   : > { %v630_v2 = vpop.f32.mrf.mxu2  ;;  %v650_v3 = vpop.f32.mrf.mxu3 }
 0x100   : > { %1318 = vst [vmem:[%s1813_s24 + $0x40] sm:$0xff] %v1274_v0   ;;  %v592_v4 = vpop.f32.mrf.mxu0  ;;  %v612_v5 = vpop.f32.mrf.mxu1  ;;  %v786_v12 = vmul.f32 %v1790_v26, %v630_v2  ;;  %v794_v13 = vmul.f32 %v1790_v26, %v650_v3 }
 0x101   : > { %1322 = vst [vmem:[%s1813_s24 + $0x60] sm:$0xff] %v1294_v1   ;;  %v771_v8 = vmul.f32 %v1790_v26, %v592_v4  ;;  %v779_v9 = vmul.f32 %v1790_v26, %v612_v5 }
 0x102   : > { %v822_v22 = vadd.f32 %v1796_v28, %v786_v12  ;;  %v830_v23 = vadd.f32 %v1796_v28, %v794_v13 }
 0x103   : > { %v807_v10 = vadd.f32 %v1796_v28, %v771_v8  ;;  %v815_v11 = vadd.f32 %v1796_v28, %v779_v9 }
 0x104   : > { %v854_v32 = vmax.f32 %v822_v22, 0.0  ;;  %v862_v33 = vmax.f32 %v830_v23, 0.0 }
 0x105   : > { %v839_v16 = vmax.f32 %v807_v10, 0.0  ;;  %v847_v17 = vmax.f32 %v815_v11, 0.0 }
 0x107   : > { %v1239_v18 = vpack.c.bf16 %v839_v16, %v838_v14  ;;  %v1259_v19 = vpack.c.bf16 %v847_v17, %v846_v15  ;;  %v632_v20 = vpop.f32.mrf.mxu2  ;;  %v652_v21 = vpop.f32.mrf.mxu3 }
 0x108   : > { %v787_v24 = vmul.f32 %v1790_v26, %v632_v20  ;;  %v795_v25 = vmul.f32 %v1790_v26, %v652_v21  ;;  %v595_v27 = vpop.f32.mrf.mxu0  ;;  %v615_v29 = vpop.f32.mrf.mxu1 }
 0x109   : > { %1311 = vst [vmem:[%s1813_s24 + $0x8] sm:$0xff] %v1239_v18   ;;  %v772_v36 = vmul.f32 %v1790_v26, %v595_v27  ;;  %v780_v37 = vmul.f32 %v1790_v26, %v615_v29 }
 0x10a   : > { %1315 = vst [vmem:[%s1813_s24 + $0x28] sm:$0xff] %v1259_v19   ;;  %v823_v30 = vadd.f32 %v1796_v28, %v787_v24  ;;  %v831_v31 = vadd.f32 %v1796_v28, %v795_v25 }
 0x10b   : > { %v808_v44 = vadd.f32 %v1796_v28, %v772_v36  ;;  %v816_v45 = vadd.f32 %v1796_v28, %v780_v37 }
 0x10c   : > { %v855_v34 = vmax.f32 %v823_v30, 0.0  ;;  %v863_v35 = vmax.f32 %v831_v31, 0.0 }
 0x10d   : > { %v840_v52 = vmax.f32 %v808_v44, 0.0  ;;  %v848_v53 = vmax.f32 %v816_v45, 0.0 }
 0x10e   : > { %v1279_v38 = vpack.c.bf16 %v855_v34, %v854_v32  ;;  %v1299_v39 = vpack.c.bf16 %v863_v35, %v862_v33 }
 0x10f   : > { %v635_v40 = vpop.f32.mrf.mxu2  ;;  %v655_v41 = vpop.f32.mrf.mxu3 }
 0x110   : > { %1319 = vst [vmem:[%s1813_s24 + $0x48] sm:$0xff] %v1279_v38   ;;  %v597_v42 = vpop.f32.mrf.mxu0  ;;  %v617_v43 = vpop.f32.mrf.mxu1  ;;  %v788_v50 = vmul.f32 %v1790_v26, %v635_v40  ;;  %v796_v51 = vmul.f32 %v1790_v26, %v655_v41 }
 0x111   : > { %1323 = vst [vmem:[%s1813_s24 + $0x68] sm:$0xff] %v1299_v39   ;;  %v773_v46 = vmul.f32 %v1790_v26, %v597_v42  ;;  %v781_v47 = vmul.f32 %v1790_v26, %v617_v43 }
 0x112   : > { %v824_v60 = vadd.f32 %v1796_v28, %v788_v50  ;;  %v832_v61 = vadd.f32 %v1796_v28, %v796_v51 }
 0x113   : > { %v809_v48 = vadd.f32 %v1796_v28, %v773_v46  ;;  %v817_v49 = vadd.f32 %v1796_v28, %v781_v47 }
 0x114   : > { %v856_v4 = vmax.f32 %v824_v60, 0.0  ;;  %v864_v5 = vmax.f32 %v832_v61, 0.0 }
 0x115   : > { %v841_v54 = vmax.f32 %v809_v48, 0.0  ;;  %v849_v55 = vmax.f32 %v817_v49, 0.0 }
 0x117   : > { %v1244_v56 = vpack.c.bf16 %v841_v54, %v840_v52  ;;  %v1264_v57 = vpack.c.bf16 %v849_v55, %v848_v53  ;;  %v637_v58 = vpop.f32.mrf.mxu2  ;;  %v657_v59 = vpop.f32.mrf.mxu3 }
 0x118   : > { %v789_v62 = vmul.f32 %v1790_v26, %v637_v58  ;;  %v797_v63 = vmul.f32 %v1790_v26, %v657_v59  ;;  %v600_v0 = vpop.f32.mrf.mxu0  ;;  %v620_v1 = vpop.f32.mrf.mxu1 }
 0x119   : > { %1312 = vst [vmem:[%s1813_s24 + $0x10] sm:$0xff] %v1244_v56   ;;  %v774_v8 = vmul.f32 %v1790_v26, %v600_v0  ;;  %v782_v9 = vmul.f32 %v1790_v26, %v620_v1 }
 0x11a   : > { %1316 = vst [vmem:[%s1813_s24 + $0x30] sm:$0xff] %v1264_v57   ;;  %v825_v2 = vadd.f32 %v1796_v28, %v789_v62  ;;  %v833_v3 = vadd.f32 %v1796_v28, %v797_v63 }
 0x11b   : > { %v810_v16 = vadd.f32 %v1796_v28, %v774_v8  ;;  %v818_v17 = vadd.f32 %v1796_v28, %v782_v9 }
 0x11c   : > { %v857_v6 = vmax.f32 %v825_v2, 0.0  ;;  %v865_v7 = vmax.f32 %v833_v3, 0.0 }
 0x11d   : > { %v842_v24 = vmax.f32 %v810_v16, 0.0  ;;  %v850_v25 = vmax.f32 %v818_v17, 0.0 }
 0x11e   : > { %v1284_v10 = vpack.c.bf16 %v857_v6, %v856_v4  ;;  %v1304_v11 = vpack.c.bf16 %v865_v7, %v864_v5 }
 0x11f   : > { %v640_v12 = vpop.f32.mrf.mxu2  ;;  %v660_v13 = vpop.f32.mrf.mxu3 }
 0x120   : > { %1320 = vst [vmem:[%s1813_s24 + $0x50] sm:$0xff] %v1284_v10   ;;  %v602_v14 = vpop.f32.mrf.mxu0  ;;  %v622_v15 = vpop.f32.mrf.mxu1  ;;  %v790_v22 = vmul.f32 %v1790_v26, %v640_v12  ;;  %v798_v23 = vmul.f32 %v1790_v26, %v660_v13 }
 0x121   : > { %1324 = vst [vmem:[%s1813_s24 + $0x70] sm:$0xff] %v1304_v11   ;;  %v775_v18 = vmul.f32 %v1790_v26, %v602_v14  ;;  %v783_v19 = vmul.f32 %v1790_v26, %v622_v15 }
 0x122   : > { %v826_v34 = vadd.f32 %v1796_v28, %v790_v22  ;;  %v834_v35 = vadd.f32 %v1796_v28, %v798_v23 }
 0x123   : > { %v811_v20 = vadd.f32 %v1796_v28, %v775_v18  ;;  %v819_v21 = vadd.f32 %v1796_v28, %v783_v19 }
 0x124   : > { %v858_v40 = vmax.f32 %v826_v34, 0.0  ;;  %v866_v41 = vmax.f32 %v834_v35, 0.0 }
 0x125   : > { %v843_v27 = vmax.f32 %v811_v20, 0.0  ;;  %v851_v29 = vmax.f32 %v819_v21, 0.0 }
 0x127   : > { %v1249_v30 = vpack.c.bf16 %v843_v27, %v842_v24  ;;  %v1269_v31 = vpack.c.bf16 %v851_v29, %v850_v25  ;;  %v642_v32 = vpop.f32.mrf.mxu2  ;;  %v662_v33 = vpop.f32.mrf.mxu3 }
 0x128   : > { %v791_v36 = vmul.f32 %v1790_v26, %v642_v32  ;;  %v799_v37 = vmul.f32 %v1790_v26, %v662_v33 }
 0x129   : > { %1313 = vst [vmem:[%s1813_s24 + $0x18] sm:$0xff] %v1249_v30  }
 0x12a   : > { %1317 = vst [vmem:[%s1813_s24 + $0x38] sm:$0xff] %v1269_v31   ;;  %v827_v38 = vadd.f32 %v1796_v28, %v791_v36  ;;  %v835_v39 = vadd.f32 %v1796_v28, %v799_v37 }
 0x12c   : > { %v859_v42 = vmax.f32 %v827_v38, 0.0  ;;  %v867_v43 = vmax.f32 %v835_v39, 0.0 }
 0x12d   : > { %939 = sbr.rel (!%p1683_p9) target bundleno = 337 (0x151), region = 56 }
 0x12e   : > { %v1289_v44 = vpack.c.bf16 %v859_v42, %v858_v40  ;;  %v1309_v45 = vpack.c.bf16 %v867_v43, %v866_v41 }
 0x130   : > { %1321 = vst [vmem:[%s1813_s24 + $0x58] sm:$0xff] %v1289_v44  }
 0x131   : > { %1325 = vst [vmem:[%s1813_s24 + $0x78] sm:$0xff] %v1309_v45  }
 0x132   : > { %s1975_s14 = smov (!%p942_p5, %s941_s14), 32 }
 0x133   : > { %s1198_s21 = sshll.u32 %s1975_s14, 2 }
 0x134   : > { %s945_s6 = ssub.s32 128, %s1198_s21 }
 0x135   : > { %s946_s12 = sshll.u32 %s945_s6, 4 }
 0x136   : > { %947 = vsyncadd %s933_s8, %s946_s12  ;;  %p1890_p8 = scmp.ne.s32.totalorder %s1198_s21, 0  ;;  %s1230_s7 = sshll.u32 %s1582_s18, 7 }
 0x137   : > { %s951_s10 = scalar_lea.hbm %s1952_s4, %s1230_s7  ;;  %s953_s13 = sshll.u32 %s1813_s24, 4  ;;  %s1899_s13 = int_to_ptr.vmem [resolvable:$true] %s953_s13 }
 0x138   : > { %s955_s1 = sshll.u32 %s951_s10, 4  ;;  %s1202_s26 = sshll.u32 %s1975_s14, 6  ;;  %s1901_s1 = int_to_ptr.hbm [resolvable:$true] %s955_s1 }
 0x139   : > { %s1493_s28 = sshra.s32 %s1899_s13, 4  ;;  %s1495_s9 = sshrl.u32 %s1202_s26, 4  ;;  %s1494_s28 = int_to_ptr.vmem [resolvable:$true] %s1493_s28 }
 0x13a   : > { %s1500_s25 = scalar_lea.vmem %s1494_s28, %s1495_s9  ;;  %s1598_s18 = smov [#allocation8]  }
 0x13b   : > { %p1501_p9 = scmp.ne.s32.totalorder %s1494_s28, %s1500_s25  ;;  %s1504_s21 = scalar_lea.vmem %s1598_s18, 256 }
 0x13c   : > { %p1506_p12 = scmp.lt.s32.totalorder %s1504_s21, %s1500_s25 }
 0x13d   : > { %p1502_p0 = pnand %p1501_p9, %p1890_p8 }
 0x13f   : > { %p1503_p4 = pneg %p1502_p0 }
 0x141   : > { %p1508_p13 = pnand %p1506_p12, %p1503_p4 }
 0x143   : > { %1511 = shalt.err (!%p1508_p13)
}
 0x144   : > { %s1512_s24 = sshra.s32 %s1901_s1, 4  ;;  %s1523_s11 = scalar_lea.hbm %s1952_s4, 900  ;;  %s1513_s24 = int_to_ptr.hbm [resolvable:$true] %s1512_s24 }
 0x145   : > { %s1519_s6 = scalar_lea.hbm %s1513_s24, %s1495_s9  ;;  %p1524_p6 = scmp.lt.s32.totalorder %s1513_s24, %s1952_s4 }
 0x146   : > { %p1520_p1 = scmp.ne.s32.totalorder %s1513_s24, %s1519_s6  ;;  %p1525_p7 = scmp.lt.s32.totalorder %s1523_s11, %s1519_s6 }
 0x148   : > { %p1521_p2 = pnand %p1520_p1, %p1890_p8  ;;  %p1526_p10 = por %p1525_p7, %p1524_p6 }
 0x14a   : > { %p1522_p3 = pneg %p1521_p2 }
 0x14c   : > { %p1527_p5 = pnand %p1526_p10, %p1522_p3 }
 0x14e   : > { %1530 = shalt.err (!%p1527_p5)
}
 0x14f   : > { %s1599_s28 = smov 64   ;;  %s1600_s9 = smov 4  }
 0x150   : > { %961 = dma.vmem_to_hbm [thread:$0]  (%p1890_p8), %s1899_s13, %s1202_s26, %s1901_s1, %s933_s8, %s1599_s28, %s1599_s28, %s1600_s9  }
 0x151 PF: > { %p1366_p9 = scmp.ge.s32.totalorder %s1590_s20, 2  ;;  %s970_s25 = sand.u32 1, %s1570_s15  }
 0x152   : > { %s971_s18 = scalar_lea.sflag [#allocation5], %s970_s25 }
 0x153   : > { %p1361_p0 = pnand %p1366_p9, %p1690_p11 }
 0x155   : > { %p1362_p4 = pneg %p1361_p0 }
 0x157   : > { %1565 = dma.done.wait (%p1362_p4), %s971_s18, 2048  }
 0x158   : > { %1567 = vsyncadd (%p1362_p4), %s971_s18, 4294965248  ;;  %s21_s20 = sadd.s32 1, %s1590_s20   ;;  %s1965_s15 = smov %s1574_s16 }
 0x159   : > { %p18_p12 = scmp.ge.s32.totalorder %s21_s20, 10   ;;  %s1966_s16 = smov %s1578_s17 }
 0x15a   : > { %s1967_s17 = smov %s1688_s30  ;;  %s1968_s18 = smov %s1586_s19 }
 0x15b   : > { %s1969_s19 = smov %s1971_s23  ;;  %20 = sbr.rel (!%p18_p12) target bundleno = 9 (0x9), region = 100 }
 0x160   :  { %977 = vsyncpa [#allocation4], 1 }
 0x161   :  { %979 = vsyncpa [#allocation4 + $0x1], 1 }
 0x162   :  { %980 = vsyncpa [#allocation7], 1 }
 0x163   :  { %981 = vsyncpa [#allocation5], 1 }
 0x164   :  { %983 = vsyncpa [#allocation5 + $0x1], 1 }

</bundles_post_ra>
